<compile_context>
chip_gen: v6e
topology: v6e:2x2x1
jax: 0.10.0
libtpu: 0.0.40
codegen_flags: <defaults>
</compile_context>

<pallas_src>
import math

import jax
import jax.numpy as jnp
from jax.experimental import pallas as pl
from jax.experimental.pallas import tpu as pltpu


def _round_up(n, m):
    return ((n + m - 1) // m) * m


def mlp_kernel(x_ref, w1_ref, b1_ref, w2_ref, b2_ref, w3_ref, b3_ref, o_ref):
    cdt = w1_ref.dtype  # compute dtype of the streamed inputs / weights
    # Layer 1: Linear(16, 32) + ReLU   (MXU, f32 accumulation)
    h1 = jnp.dot(x_ref[...], w1_ref[...], preferred_element_type=jnp.float32)
    h1 = jnp.maximum(h1 + b1_ref[...], 0.0)
    # Layer 2: Linear(32, 16) + ReLU
    h2 = jnp.dot(h1.astype(cdt), w2_ref[...], preferred_element_type=jnp.float32)
    h2 = jnp.maximum(h2 + b2_ref[...], 0.0)
    # Layer 3: Linear(16, 4) + Sigmoid  (elementwise stays f32)
    z = jnp.dot(h2.astype(cdt), w3_ref[...], preferred_element_type=jnp.float32)
    o_ref[...] = jax.nn.sigmoid(z + b3_ref[...]).astype(o_ref.dtype)


def mlp_forward(x, params, *, block_b=1024, compute_dtype=jnp.bfloat16):
    w1, b1, w2, b2, w3, b3 = params
    B, d_in = x.shape
    d_out = w3.shape[1]

    # bf16 inputs/weights halve HBM bytes (the binding resource). Biases and
    # all elementwise math stay f32.
    xc = x.astype(compute_dtype)
    w1c, w2c, w3c = (w.astype(compute_dtype) for w in (w1, w2, w3))
    b1c, b2c, b3c = (b.astype(jnp.float32) for b in (b1, b2, b3))

    # Batch tile: big enough to amortize per-step overhead, no bigger than
    # needed for small B. Pad the batch up to a tile multiple so block shapes
    # satisfy the (8, 128) sublane rule; padded rows are sliced off below.
    tb = min(block_b, _round_up(B, 128))
    n_blocks = pl.cdiv(B, tb)
    b_pad = n_blocks * tb
    if b_pad != B:
        xc = jnp.pad(xc, ((0, b_pad - B), (0, 0)))

    # Constant index_map => the block never changes => fetched once and kept
    # resident in VMEM across all grid steps.
    const = lambda shape: pl.BlockSpec(shape, lambda i, _s=shape: (0,) * len(_s))

    out = pl.pallas_call(
        mlp_kernel,
        out_shape=jax.ShapeDtypeStruct((b_pad, d_out), jnp.float32),
        grid=(n_blocks,),
        in_specs=[
            pl.BlockSpec((tb, d_in), lambda i: (i, 0)),   # streamed x tiles
            const(w1c.shape), const(b1c.shape),           # VMEM-resident params
            const(w2c.shape), const(b2c.shape),
            const(w3c.shape), const(b3c.shape),
        ],
        out_specs=pl.BlockSpec((tb, d_out), lambda i: (i, 0)),
        compiler_params=pltpu.CompilerParams(
            dimension_semantics=("parallel",)),  # v7x megacore; no-op on 1-TC chips
    )(xc, w1c, b1c, w2c, b2c, w3c, b3c)

    return out[:B]


def init_linear(key, fan_in, fan_out):
    # PyTorch nn.Linear default init: U(-1/sqrt(fan_in), 1/sqrt(fan_in)).
    # Weights stored as [in, out] so y = x @ W + b (== x @ W_torch.T + b).
    kw, kb = jax.random.split(key)
    bound = 1.0 / math.sqrt(fan_in)
    w = jax.random.uniform(kw, (fan_in, fan_out), jnp.float32, -bound, bound)
    b = jax.random.uniform(kb, (1, fan_out), jnp.float32, -bound, bound)
    return w, b


def reference_forward(x, params, compute_dtype=jnp.float32):
    # Pure-JAX reference; mirrors the kernel's quantization points so the
    # comparison is tight for both f32 and bf16 compute dtypes.
    w1, b1, w2, b2, w3, b3 = params
    q = lambda a: a.astype(compute_dtype).astype(jnp.float32)
    h1 = jnp.maximum(jnp.dot(q(x), q(w1), precision="highest") + b1, 0.0)
    h2 = jnp.maximum(jnp.dot(q(h1), q(w2), precision="highest") + b2, 0.0)
    z = jnp.dot(q(h2), q(w3), precision="highest") + b3
    return jax.nn.sigmoid(z)


if __name__ == "__main__":
    key = jax.random.PRNGKey(0)
    k_x, k1, k2, k3 = jax.random.split(key, 4)

    B = 8
    x = jax.random.normal(k_x, (B, 16), jnp.float32)

    w1, b1 = init_linear(k1, 16, 32)
    w2, b2 = init_linear(k2, 32, 16)
    w3, b3 = init_linear(k3, 16, 4)
    params = (w1, b1, w2, b2, w3, b3)

    # SPEED_WEIGHT is a registered non-trainable scalar in the PyTorch module
    # but is never used in forward(), so it does not affect the kernel.
    # TODO(synk): SPEED_WEIGHT parameter intentionally omitted (unused in forward).

    # 1) Optimized bf16-input path (the deliverable).
    out = jax.block_until_ready(mlp_forward(x, params))
    ref = reference_forward(x, params, compute_dtype=jnp.bfloat16)
    assert out.shape == (B, 4)
    assert jnp.allclose(out, ref, atol=2e-3, rtol=2e-3)

    # 2) Full-f32 path, tight check against the f32 reference.
    out32 = jax.block_until_ready(mlp_forward(x, params, compute_dtype=jnp.float32))
    ref32 = reference_forward(x, params, compute_dtype=jnp.float32)
    assert jnp.allclose(out32, ref32, atol=1e-4, rtol=1e-4)

    # 3) Batch that exercises multiple grid steps + batch padding (3 tiles of 128).
    B2 = 300
    x2 = jax.random.normal(jax.random.PRNGKey(1), (B2, 16), jnp.float32)
    out2 = jax.block_until_ready(mlp_forward(x2, params, block_b=128))
    ref2 = reference_forward(x2, params, compute_dtype=jnp.bfloat16)
    assert out2.shape == (B2, 4)
    assert jnp.allclose(out2, ref2, atol=2e-3, rtol=2e-3)

    print("KERNEL_OK")
</pallas_src>

<mosaic_0001>
module attributes {stable_mosaic.version = 11 : i64} {
  func.func @mlp_kernel(%arg0: i32, %arg1: memref<128x16xbf16, #tpu.memory_space<vmem>>, %arg2: memref<16x32xbf16, #tpu.memory_space<vmem>>, %arg3: memref<1x32xf32, #tpu.memory_space<vmem>>, %arg4: memref<32x16xbf16, #tpu.memory_space<vmem>>, %arg5: memref<1x16xf32, #tpu.memory_space<vmem>>, %arg6: memref<16x4xbf16, #tpu.memory_space<vmem>>, %arg7: memref<1x4xf32, #tpu.memory_space<vmem>>, %arg8: memref<128x4xf32, #tpu.memory_space<vmem>>) attributes {dimension_semantics = [#tpu.dimension_semantics<parallel>], iteration_bounds = array<i64: 1>, scalar_prefetch = 0 : i64, scratch_operands = 0 : i64, tpu.core_type = #tpu.core_type<tc>, window_params = [{transform_indices = @transform_0, window_bounds = array<i64: 128, 16>}, {pipeline_mode = #tpu.pipeline_mode<synchronous>, transform_indices = @transform_1, window_bounds = array<i64: 16, 32>}, {pipeline_mode = #tpu.pipeline_mode<synchronous>, transform_indices = @transform_2, window_bounds = array<i64: 1, 32>}, {pipeline_mode = #tpu.pipeline_mode<synchronous>, transform_indices = @transform_3, window_bounds = array<i64: 32, 16>}, {pipeline_mode = #tpu.pipeline_mode<synchronous>, transform_indices = @transform_4, window_bounds = array<i64: 1, 16>}, {pipeline_mode = #tpu.pipeline_mode<synchronous>, transform_indices = @transform_5, window_bounds = array<i64: 16, 4>}, {pipeline_mode = #tpu.pipeline_mode<synchronous>, transform_indices = @transform_6, window_bounds = array<i64: 1, 4>}, {transform_indices = @transform_7, window_bounds = array<i64: 128, 4>}]} {
    %c0 = arith.constant 0 : index
    %c0_0 = arith.constant 0 : index
    %0 = vector.load %arg1[%c0, %c0_0] : memref<128x16xbf16, #tpu.memory_space<vmem>>, vector<128x16xbf16>
    %c0_1 = arith.constant 0 : index
    %c0_2 = arith.constant 0 : index
    %1 = vector.load %arg2[%c0_1, %c0_2] : memref<16x32xbf16, #tpu.memory_space<vmem>>, vector<16x32xbf16>
    %cst = arith.constant dense<0.000000e+00> : vector<128x32xf32>
    %2 = tpu.matmul %0, %1, %cst {dimension_numbers = #tpu.dot_dimension_numbers<[1], [0], [0], [1], [0, 0, 1, 1], [], []>} : vector<128x16xbf16>, vector<16x32xbf16>, vector<128x32xf32> -> vector<128x32xf32>
    %c0_3 = arith.constant 0 : index
    %c0_4 = arith.constant 0 : index
    %3 = vector.load %arg3[%c0_3, %c0_4] : memref<1x32xf32, #tpu.memory_space<vmem>>, vector<1x32xf32>
    %4 = vector.broadcast %3 : vector<1x32xf32> to vector<128x32xf32>
    %5 = arith.addf %2, %4 : vector<128x32xf32>
    %cst_5 = arith.constant 0.000000e+00 : f32
    %6 = vector.broadcast %cst_5 : f32 to vector<128x32xf32>
    %7 = arith.maximumf %5, %6 : vector<128x32xf32>
    %8 = arith.truncf %7 : vector<128x32xf32> to vector<128x32xbf16>
    %c0_6 = arith.constant 0 : index
    %c0_7 = arith.constant 0 : index
    %9 = vector.load %arg4[%c0_6, %c0_7] : memref<32x16xbf16, #tpu.memory_space<vmem>>, vector<32x16xbf16>
    %cst_8 = arith.constant dense<0.000000e+00> : vector<128x16xf32>
    %10 = tpu.matmul %8, %9, %cst_8 {dimension_numbers = #tpu.dot_dimension_numbers<[1], [0], [0], [1], [0, 0, 1, 1], [], []>} : vector<128x32xbf16>, vector<32x16xbf16>, vector<128x16xf32> -> vector<128x16xf32>
    %c0_9 = arith.constant 0 : index
    %c0_10 = arith.constant 0 : index
    %11 = vector.load %arg5[%c0_9, %c0_10] : memref<1x16xf32, #tpu.memory_space<vmem>>, vector<1x16xf32>
    %12 = vector.broadcast %11 : vector<1x16xf32> to vector<128x16xf32>
    %13 = arith.addf %10, %12 : vector<128x16xf32>
    %cst_11 = arith.constant 0.000000e+00 : f32
    %14 = vector.broadcast %cst_11 : f32 to vector<128x16xf32>
    %15 = arith.maximumf %13, %14 : vector<128x16xf32>
    %16 = arith.truncf %15 : vector<128x16xf32> to vector<128x16xbf16>
    %c0_12 = arith.constant 0 : index
    %c0_13 = arith.constant 0 : index
    %17 = vector.load %arg6[%c0_12, %c0_13] : memref<16x4xbf16, #tpu.memory_space<vmem>>, vector<16x4xbf16>
    %cst_14 = arith.constant dense<0.000000e+00> : vector<128x4xf32>
    %18 = tpu.matmul %16, %17, %cst_14 {dimension_numbers = #tpu.dot_dimension_numbers<[1], [0], [0], [1], [0, 0, 1, 1], [], []>} : vector<128x16xbf16>, vector<16x4xbf16>, vector<128x4xf32> -> vector<128x4xf32>
    %c0_15 = arith.constant 0 : index
    %c0_16 = arith.constant 0 : index
    %19 = vector.load %arg7[%c0_15, %c0_16] : memref<1x4xf32, #tpu.memory_space<vmem>>, vector<1x4xf32>
    %20 = vector.broadcast %19 : vector<1x4xf32> to vector<128x4xf32>
    %21 = arith.addf %18, %20 : vector<128x4xf32>
    %22 = arith.negf %21 : vector<128x4xf32>
    %23 = math.exp %22 : vector<128x4xf32>
    %cst_17 = arith.constant 1.000000e+00 : f32
    %24 = vector.broadcast %cst_17 : f32 to vector<128x4xf32>
    %25 = arith.addf %24, %23 : vector<128x4xf32>
    %26 = arith.divf %24, %25 : vector<128x4xf32>
    %c0_18 = arith.constant 0 : index
    %c0_19 = arith.constant 0 : index
    %27 = vector.load %arg8[%c0_18, %c0_19] : memref<128x4xf32, #tpu.memory_space<vmem>>, vector<128x4xf32>
    tpu.vector_store %arg8[%c0_18, %c0_19], %26 {strides = array<i32>} : memref<128x4xf32, #tpu.memory_space<vmem>>, vector<128x4xf32>,
    return
  }
  func.func @transform_0(%arg0: i32) -> (i32, i32) {
    %c0_i32 = arith.constant 0 : i32
    %c0_i32_0 = arith.constant 0 : i32
    return %arg0, %c0_i32 : i32, i32
  }
  func.func @transform_1(%arg0: i32) -> (i32, i32) {
    %c0_i32 = arith.constant 0 : i32
    %c0_i32_0 = arith.constant 0 : i32
    %c0_i32_1 = arith.constant 0 : i32
    return %c0_i32, %c0_i32_0 : i32, i32
  }
  func.func @transform_2(%arg0: i32) -> (i32, i32) {
    %c0_i32 = arith.constant 0 : i32
    %c0_i32_0 = arith.constant 0 : i32
    %c0_i32_1 = arith.constant 0 : i32
    return %c0_i32, %c0_i32_0 : i32, i32
  }
  func.func @transform_3(%arg0: i32) -> (i32, i32) {
    %c0_i32 = arith.constant 0 : i32
    %c0_i32_0 = arith.constant 0 : i32
    %c0_i32_1 = arith.constant 0 : i32
    return %c0_i32, %c0_i32_0 : i32, i32
  }
  func.func @transform_4(%arg0: i32) -> (i32, i32) {
    %c0_i32 = arith.constant 0 : i32
    %c0_i32_0 = arith.constant 0 : i32
    %c0_i32_1 = arith.constant 0 : i32
    return %c0_i32, %c0_i32_0 : i32, i32
  }
  func.func @transform_5(%arg0: i32) -> (i32, i32) {
    %c0_i32 = arith.constant 0 : i32
    %c0_i32_0 = arith.constant 0 : i32
    %c0_i32_1 = arith.constant 0 : i32
    return %c0_i32, %c0_i32_0 : i32, i32
  }
  func.func @transform_6(%arg0: i32) -> (i32, i32) {
    %c0_i32 = arith.constant 0 : i32
    %c0_i32_0 = arith.constant 0 : i32
    %c0_i32_1 = arith.constant 0 : i32
    return %c0_i32, %c0_i32_0 : i32, i32
  }
  func.func @transform_7(%arg0: i32) -> (i32, i32) {
    %c0_i32 = arith.constant 0 : i32
    %c0_i32_0 = arith.constant 0 : i32
    return %arg0, %c0_i32 : i32, i32
  }
}

</mosaic_0001>

<bundles_post_ra>
// kernel: tpu_custom_call.1
= control target key start
LH: loop header
LB: loop body
LE: loop exit
PB: predicated region body
PF: predicated region fallthrough
CT: control target
= control target key end

     0   :  { %vm98_vm0 = vcmask 130048   ;;  %vm267_vm1 = vcmask 261120   ;;  %vm645_vm2 = vcmask 31744   ;;  %s1074_s1 = inlined_call_operand.vmem [shape: bf16[16,32], index: 1, kind: input, shape index: {}]   ;;  %s1075_s0 = inlined_call_operand.vmem [shape: bf16[128,16], index: 0, kind: input, shape index: {}]   ;;  %s1076_s3 = inlined_call_operand.vmem [shape: bf16[32,16], index: 3, kind: input, shape index: {}]   ;;  %s1077_s5 = inlined_call_operand.vmem [shape: bf16[16,4], index: 5, kind: input, shape index: {}]   ;;  %s1078_s2 = inlined_call_operand.vmem [shape: f32[1,32], index: 2, kind: input, shape index: {}]   ;;  %s1079_s4 = inlined_call_operand.vmem [shape: f32[1,16], index: 4, kind: input, shape index: {}]   ;;  %s1080_s6 = inlined_call_operand.vmem [shape: f32[1,4], index: 6, kind: input, shape index: {}]   ;;  %s1081_s7 = inlined_call_operand.vmem [shape: f32[128,4], index: 7, kind: output, shape index: {}]  }
   0x1   :  { %v807_v0 = vld [vmem:[%s1074_s1] sm:$0xff]   ;;  %v809_v2 = vld [vmem:[%s1075_s0 + $0x8] sm:$0xff]   ;;  %v810_v3 = vld [vmem:[%s1075_s0 + $0x10] sm:$0xff]  }
   0x2   :  { %v808_v1 = vld [vmem:[%s1075_s0] sm:$0xff]   ;;  %749 = vmatprep.subr.bf16.mxu0 %v807_v0  ;;  %805 = vmatprep.subr.bf16.mxu1 %v807_v0  ;;  %v813_v5 = vld [vmem:[%s1075_s0 + $0x28] sm:$0xff]   ;;  %v814_v6 = vld [vmem:[%s1075_s0 + $0x30] sm:$0xff]  }
   0x3   :  { %750 = vmatpush3.bf16.msra.mxu0 %v807_v0  ;;  %751 = vmatprep.mubr.msk.bf16.mxu0 %vm98_vm0, %v808_v1  ;;  %v812_v4 = vld [vmem:[%s1075_s0 + $0x20] sm:$0xff]   ;;  %v816_v7 = vld [vmem:[%s1076_s3 + $0x8] sm:$0xff]   ;;  %v811_v8 = vld [vmem:[%s1075_s0 + $0x18] sm:$0xff]  }
   0x4   :  { %806 = vmatpush3.bf16.msra.mxu1 %v807_v0  ;;  %759 = vmatprep.mubr.msk.bf16.mxu1 %vm98_vm0, %v812_v4  ;;  %v815_v9 = vld [vmem:[%s1075_s0 + $0x38] sm:$0xff]   ;;  %v817_v10 = vld [vmem:[%s1076_s3] sm:$0xff]  }
   0x5   :  { %767 = vmatprep.subr.bf16.mxu1 %v816_v7  ;;  %v818_v11 = vld [vmem:[%s1077_s5] sm:$0xff]  }
   0x6   :  { %752 = vmatmul.mubr.msk.bf16.vlgmr.msra.gmra.mxu0 %vm98_vm0, %v809_v2  ;;  %787 = vmatprep.subr.bf16.mxu0 %v818_v11  ;;  %v666_v15 = vld [vmem:[%s1078_s2] ss:$0 sm:$0xff] }
   0x7   :  { %755 = vmatprep.mubr.msk.bf16.mxu0 %vm98_vm0, %v810_v3  ;;  %760 = vmatmul.mubr.msk.bf16.vlgmr.msra.gmra.mxu1 %vm98_vm0, %v813_v5 }
   0x8   :  { %763 = vmatprep.mubr.msk.bf16.mxu1 %vm98_vm0, %v814_v6  ;;  %768 = vmatpush3.bf16.msra.mxu1 %v816_v7  ;;  %v684_v7 = vld [vmem:[%s1079_s4] ss:$0 sm:$0xff] }
   0x9   :  { %769 = vmatprep.subr.bf16.mxu1 %v817_v10  ;;  %788 = vmatpush3.bf16.msra.mxu0 %v818_v11 }
   0xc   :  { %770 = vmatpush3.bf16.msra.mxu1 %v817_v10 }
   0xe   :  { %756 = vmatmul.mubr.msk.bf16.gmra.mxu0 %vm98_vm0, %v811_v8 }
   0xf   :  { %764 = vmatmul.mubr.msk.bf16.gmra.mxu1 %vm98_vm0, %v815_v9 }
  0xc6   :  { %v753_v12 = vpop.f32.mrf.mxu0 }
  0xc7   :  { %v761_v14 = vpop.f32.mrf.mxu1  ;;  %v166_v20 = vadd.f32 %v753_v12, %v666_v15 }
  0xc8   :  { %v157_v13 = vpop.f32.mrf.mxu0  ;;  %v198_v55 = vadd.f32 %v761_v14, %v666_v15 }
  0xc9   :  { %v189_v17 = vpop.f32.mrf.mxu1  ;;  %v158_v18 = vadd.f32 %v666_v15, %v157_v13  ;;  %v222_v29 = vmax.f32 %v166_v20, 0.0 }
  0xca   :  { %v754_v16 = vpop.f32.mrf.mxu0  ;;  %v190_v33 = vadd.f32 %v666_v15, %v189_v17  ;;  %v230_v60 = vmax.f32 %v198_v55, 0.0 }
  0xcb   :  { %v169_v19 = vadd.f32 %v754_v16, %v666_v15  ;;  %v762_v22 = vpop.f32.mrf.mxu1  ;;  %v220_v27 = vmax.f32 %v158_v18, 0.0 }
  0xcc   :  { %v160_v21 = vpop.f32.mrf.mxu0  ;;  %v228_v43 = vmax.f32 %v190_v33, 0.0  ;;  %v201_v57 = vadd.f32 %v762_v22, %v666_v15 }
  0xcd   :  { %v161_v23 = vadd.f32 %v666_v15, %v160_v21  ;;  %v223_v24 = vmax.f32 %v169_v19, 0.0  ;;  %v192_v26 = vpop.f32.mrf.mxu1 }
  0xce   :  { %v757_v25 = vpop.f32.mrf.mxu0  ;;  %v193_v34 = vadd.f32 %v666_v15, %v192_v26  ;;  %v231_v61 = vmax.f32 %v201_v57, 0.0 }
  0xcf   :  { %v221_v28 = vmax.f32 %v161_v23, 0.0  ;;  %v765_v31 = vpop.f32.mrf.mxu1  ;;  %v237_v35 = vpack.c.bf16 %v223_v24, %v222_v29  ;;  %v182_v40 = vadd.f32 %v757_v25, %v666_v15 }
  0xd0   :  { %v173_v30 = vpop.f32.mrf.mxu0  ;;  %v229_v45 = vmax.f32 %v193_v34, 0.0  ;;  %v241_v63 = vpack.c.bf16 %v231_v61, %v230_v60  ;;  %v214_v0 = vadd.f32 %v765_v31, %v666_v15 }
  0xd1   :  { %v236_v32 = vpack.c.bf16 %v221_v28, %v220_v27  ;;  %v205_v37 = vpop.f32.mrf.mxu1  ;;  %v174_v38 = vadd.f32 %v666_v15, %v173_v30  ;;  %v226_v50 = vmax.f32 %v182_v40, 0.0 }
  0xd2   :  { %v758_v36 = vpop.f32.mrf.mxu0  ;;  %v240_v52 = vpack.c.bf16 %v229_v45, %v228_v43  ;;  %v206_v53 = vadd.f32 %v666_v15, %v205_v37  ;;  %v234_v2 = vmax.f32 %v214_v0, 0.0 }
  0xd3   :  { %v185_v39 = vadd.f32 %v758_v36, %v666_v15  ;;  %771 = vmatprep.mubr.msk.bf16.mxu1 %vm267_vm1, %v236_v32  ;;  %v766_v42 = vpop.f32.mrf.mxu1  ;;  %v224_v48 = vmax.f32 %v174_v38, 0.0 }
  0xd4   :  { %v176_v41 = vpop.f32.mrf.mxu0  ;;  %772 = vmatmul.mubr.msk.bf16.vlgmr.msra.gmra.mxu1 %vm267_vm1, %v237_v35  ;;  %v232_v58 = vmax.f32 %v206_v53, 0.0  ;;  %v217_v1 = vadd.f32 %v766_v42, %v666_v15 }
  0xd5   :  { %v177_v44 = vadd.f32 %v666_v15, %v176_v41  ;;  %v227_v46 = vmax.f32 %v185_v39, 0.0  ;;  %v208_v47 = vpop.f32.mrf.mxu1 }
  0xd6   :  { %v209_v54 = vadd.f32 %v666_v15, %v208_v47  ;;  %v235_v3 = vmax.f32 %v217_v1, 0.0 }
  0xd7   :  { %v225_v49 = vmax.f32 %v177_v44, 0.0  ;;  %v239_v56 = vpack.c.bf16 %v227_v46, %v226_v50 }
  0xd8   :  { %v233_v59 = vmax.f32 %v209_v54, 0.0  ;;  %v243_v4 = vpack.c.bf16 %v235_v3, %v234_v2 }
  0xd9   :  { %v238_v51 = vpack.c.bf16 %v225_v49, %v224_v48 }
  0xda   :  { %v242_v62 = vpack.c.bf16 %v233_v59, %v232_v58 }
  0xdb   :  { %775 = vmatprep.mubr.msk.bf16.mxu1 %vm267_vm1, %v238_v51 }
  0xdc   :  { %776 = vmatmul.mubr.msk.bf16.gmra.mxu1 %vm267_vm1, %v239_v56 }
  0xdd   :  { %779 = vmatprep.mubr.msk.bf16.mxu1 %vm267_vm1, %v240_v52 }
  0xe4   :  { %780 = vmatmul.mubr.msk.bf16.gmra.mxu1 %vm267_vm1, %v241_v63 }
  0xe5   :  { %783 = vmatprep.mubr.msk.bf16.mxu1 %vm267_vm1, %v242_v62  ;;  %v992_v62 = vld [vmem:[%s1080_s6] ss:$0 sm:$0xff] }
  0xec   :  { %784 = vmatmul.mubr.msk.bf16.gmra.mxu1 %vm267_vm1, %v243_v4 }
 0x194   :  { %v773_v5 = vpop.f32.mrf.mxu1 }
 0x195   :  { %v335_v11 = vadd.f32 %v773_v5, %v684_v7 }
 0x196   :  { %v326_v6 = vpop.f32.mrf.mxu1 }
 0x197   :  { %v327_v9 = vadd.f32 %v684_v7, %v326_v6  ;;  %v391_v18 = vmax.f32 %v335_v11, 0.0 }
 0x198   :  { %v774_v8 = vpop.f32.mrf.mxu1 }
 0x199   :  { %v338_v10 = vadd.f32 %v774_v8, %v684_v7  ;;  %v389_v16 = vmax.f32 %v327_v9, 0.0 }
 0x19a   :  { %v329_v12 = vpop.f32.mrf.mxu1 }
 0x19b   :  { %v330_v13 = vadd.f32 %v684_v7, %v329_v12  ;;  %v392_v14 = vmax.f32 %v338_v10, 0.0 }
 0x19c   :  { %v777_v15 = vpop.f32.mrf.mxu1 }
 0x19d   :  { %v390_v17 = vmax.f32 %v330_v13, 0.0  ;;  %v406_v21 = vpack.c.bf16 %v392_v14, %v391_v18  ;;  %v351_v25 = vadd.f32 %v777_v15, %v684_v7 }
 0x19e   :  { %v342_v19 = vpop.f32.mrf.mxu1 }
 0x19f   :  { %v405_v20 = vpack.c.bf16 %v390_v17, %v389_v16  ;;  %v343_v23 = vadd.f32 %v684_v7, %v342_v19  ;;  %v395_v32 = vmax.f32 %v351_v25, 0.0 }
 0x1a0   :  { %v778_v22 = vpop.f32.mrf.mxu1 }
 0x1a1   :  { %v354_v24 = vadd.f32 %v778_v22, %v684_v7  ;;  %789 = vmatprep.mubr.msk.bf16.mxu0 %vm98_vm0, %v405_v20  ;;  %v393_v30 = vmax.f32 %v343_v23, 0.0 }
 0x1a2   :  { %v345_v26 = vpop.f32.mrf.mxu1  ;;  %790 = vmatmul.mubr.msk.bf16.vlgmr.msra.gmra.mxu0 %vm98_vm0, %v406_v21 }
 0x1a3   :  { %v346_v27 = vadd.f32 %v684_v7, %v345_v26  ;;  %v396_v28 = vmax.f32 %v354_v24, 0.0 }
 0x1a4   :  { %v781_v29 = vpop.f32.mrf.mxu1 }
 0x1a5   :  { %v394_v31 = vmax.f32 %v346_v27, 0.0  ;;  %v408_v35 = vpack.c.bf16 %v396_v28, %v395_v32  ;;  %v367_v39 = vadd.f32 %v781_v29, %v684_v7 }
 0x1a6   :  { %v358_v33 = vpop.f32.mrf.mxu1 }
 0x1a7   :  { %v407_v34 = vpack.c.bf16 %v394_v31, %v393_v30  ;;  %v359_v37 = vadd.f32 %v684_v7, %v358_v33  ;;  %v399_v46 = vmax.f32 %v367_v39, 0.0 }
 0x1a8   :  { %v782_v36 = vpop.f32.mrf.mxu1 }
 0x1a9   :  { %v370_v38 = vadd.f32 %v782_v36, %v684_v7  ;;  %793 = vmatprep.mubr.msk.bf16.mxu0 %vm98_vm0, %v407_v34  ;;  %v397_v44 = vmax.f32 %v359_v37, 0.0 }
 0x1aa   :  { %v361_v40 = vpop.f32.mrf.mxu1  ;;  %794 = vmatmul.mubr.msk.bf16.gmra.mxu0 %vm98_vm0, %v408_v35 }
 0x1ab   :  { %v362_v41 = vadd.f32 %v684_v7, %v361_v40  ;;  %v400_v42 = vmax.f32 %v370_v38, 0.0 }
 0x1ac   :  { %v785_v43 = vpop.f32.mrf.mxu1 }
 0x1ad   :  { %v398_v45 = vmax.f32 %v362_v41, 0.0  ;;  %v410_v49 = vpack.c.bf16 %v400_v42, %v399_v46  ;;  %v383_v53 = vadd.f32 %v785_v43, %v684_v7 }
 0x1ae   :  { %v374_v47 = vpop.f32.mrf.mxu1 }
 0x1af   :  { %v409_v48 = vpack.c.bf16 %v398_v45, %v397_v44  ;;  %v375_v51 = vadd.f32 %v684_v7, %v374_v47  ;;  %v403_v59 = vmax.f32 %v383_v53, 0.0 }
 0x1b0   :  { %v786_v50 = vpop.f32.mrf.mxu1 }
 0x1b1   :  { %v386_v52 = vadd.f32 %v786_v50, %v684_v7  ;;  %797 = vmatprep.mubr.msk.bf16.mxu0 %vm98_vm0, %v409_v48  ;;  %v401_v57 = vmax.f32 %v375_v51, 0.0 }
 0x1b2   :  { %v377_v54 = vpop.f32.mrf.mxu1  ;;  %798 = vmatmul.mubr.msk.bf16.gmra.mxu0 %vm98_vm0, %v410_v49 }
 0x1b3   :  { %v378_v55 = vadd.f32 %v684_v7, %v377_v54  ;;  %v404_v56 = vmax.f32 %v386_v52, 0.0 }
 0x1b5   :  { %v402_v58 = vmax.f32 %v378_v55, 0.0  ;;  %v412_v61 = vpack.c.bf16 %v404_v56, %v403_v59 }
 0x1b7   :  { %v411_v60 = vpack.c.bf16 %v402_v58, %v401_v57 }
 0x1b9   :  { %801 = vmatprep.mubr.msk.bf16.mxu0 %vm98_vm0, %v411_v60 }
 0x1ba   :  { %802 = vmatmul.mubr.msk.bf16.gmra.mxu0 %vm98_vm0, %v412_v61 }
 0x262   :  { %v791_v63 = vpop.f32.mrf.mxu0 }
 0x263   :  { %v495_v0 = vadd.f32 %v791_v63, %v992_v62 }
 0x264   :  { %v486_v1 = vpop.f32.mrf.mxu0 }
 0x265   :  { %v707_v2 = vmul.f32 -1.442695, %v495_v0  ;;  %v487_v3 = vadd.f32 %v992_v62, %v486_v1 }
 0x266   :  { %v792_v4 = vpop.f32.mrf.mxu0 }
 0x267   :  { %819 = vpow2.f32 %v707_v2  ;;  %v705_v5 = vmul.f32 -1.442695, %v487_v3  ;;  %v498_v6 = vadd.f32 %v792_v4, %v992_v62 }
 0x268   :  { %v489_v7 = vpop.f32.mrf.mxu0 }
 0x269   :  { %821 = vpow2.f32 %v705_v5  ;;  %v708_v8 = vmul.f32 -1.442695, %v498_v6  ;;  %v490_v9 = vadd.f32 %v992_v62, %v489_v7 }
 0x26a   :  { %v795_v10 = vpop.f32.mrf.mxu0 }
 0x26b   :  { %823 = vpow2.f32 %v708_v8  ;;  %v706_v11 = vmul.f32 -1.442695, %v490_v9  ;;  %v511_v12 = vadd.f32 %v795_v10, %v992_v62 }
 0x26c   :  { %v502_v13 = vpop.f32.mrf.mxu0 }
 0x26d   :  { %825 = vpow2.f32 %v706_v11  ;;  %v711_v14 = vmul.f32 -1.442695, %v511_v12  ;;  %v503_v15 = vadd.f32 %v992_v62, %v502_v13 }
 0x26e   :  { %v796_v16 = vpop.f32.mrf.mxu0 }
 0x26f   :  { %827 = vpow2.f32 %v711_v14  ;;  %v709_v17 = vmul.f32 -1.442695, %v503_v15  ;;  %v514_v18 = vadd.f32 %v796_v16, %v992_v62 }
 0x270   :  { %v505_v19 = vpop.f32.mrf.mxu0 }
 0x271   :  { %829 = vpow2.f32 %v709_v17  ;;  %v712_v20 = vmul.f32 -1.442695, %v514_v18  ;;  %v506_v21 = vadd.f32 %v992_v62, %v505_v19 }
 0x272   :  { %v799_v22 = vpop.f32.mrf.mxu0 }
 0x273   :  { %831 = vpow2.f32 %v712_v20  ;;  %v710_v23 = vmul.f32 -1.442695, %v506_v21  ;;  %v527_v24 = vadd.f32 %v799_v22, %v992_v62 }
 0x274   :  { %v820_v25 = vpop.eup %819  ;;  %v518_v26 = vpop.f32.mrf.mxu0 }
 0x275   :  { %v599_v27 = vadd.f32 1.0, %v820_v25  ;;  %833 = vpow2.f32 %v710_v23  ;;  %v715_v28 = vmul.f32 -1.442695, %v527_v24  ;;  %v519_v29 = vadd.f32 %v992_v62, %v518_v26 }
 0x276   :  { %v822_v30 = vpop.eup %821  ;;  %v800_v31 = vpop.f32.mrf.mxu0 }
 0x277   :  { %835 = vrcp.f32 %v599_v27  ;;  %v597_v32 = vadd.f32 1.0, %v822_v30  ;;  %v713_v33 = vmul.f32 -1.442695, %v519_v29  ;;  %v530_v34 = vadd.f32 %v800_v31, %v992_v62 }
 0x278   :  { %v824_v35 = vpop.eup %823  ;;  %837 = vpow2.f32 %v715_v28  ;;  %v521_v36 = vpop.f32.mrf.mxu0 }
 0x279   :  { %839 = vrcp.f32 %v597_v32  ;;  %v600_v37 = vadd.f32 1.0, %v824_v35  ;;  %v716_v38 = vmul.f32 -1.442695, %v530_v34  ;;  %v522_v39 = vadd.f32 %v992_v62, %v521_v36 }
 0x27a   :  { %v826_v40 = vpop.eup %825  ;;  %841 = vpow2.f32 %v713_v33  ;;  %v803_v41 = vpop.f32.mrf.mxu0 }
 0x27b   :  { %843 = vrcp.f32 %v600_v37  ;;  %v598_v42 = vadd.f32 1.0, %v826_v40  ;;  %v714_v43 = vmul.f32 -1.442695, %v522_v39  ;;  %v543_v44 = vadd.f32 %v803_v41, %v992_v62 }
 0x27c   :  { %v828_v45 = vpop.eup %827  ;;  %845 = vpow2.f32 %v716_v38  ;;  %v534_v46 = vpop.f32.mrf.mxu0 }
 0x27d   :  { %847 = vrcp.f32 %v598_v42  ;;  %v603_v47 = vadd.f32 1.0, %v828_v45  ;;  %v719_v48 = vmul.f32 -1.442695, %v543_v44  ;;  %v535_v49 = vadd.f32 %v992_v62, %v534_v46 }
 0x27e   :  { %v830_v50 = vpop.eup %829  ;;  %849 = vpow2.f32 %v714_v43  ;;  %v804_v51 = vpop.f32.mrf.mxu0 }
 0x27f   :  { %851 = vrcp.f32 %v603_v47  ;;  %v601_v52 = vadd.f32 1.0, %v830_v50  ;;  %v717_v53 = vmul.f32 -1.442695, %v535_v49  ;;  %v546_v54 = vadd.f32 %v804_v51, %v992_v62 }
 0x280   :  { %v832_v55 = vpop.eup %831  ;;  %853 = vpow2.f32 %v719_v48  ;;  %v537_v56 = vpop.f32.mrf.mxu0 }
 0x281   :  { %855 = vrcp.f32 %v601_v52  ;;  %v604_v57 = vadd.f32 1.0, %v832_v55  ;;  %v720_v58 = vmul.f32 -1.442695, %v546_v54  ;;  %v538_v59 = vadd.f32 %v992_v62, %v537_v56 }
 0x282   :  { %v834_v60 = vpop.eup %833  ;;  %857 = vpow2.f32 %v717_v53 }
 0x283   :  { %859 = vrcp.f32 %v604_v57  ;;  %v602_v61 = vadd.f32 1.0, %v834_v60  ;;  %v718_v63 = vmul.f32 -1.442695, %v538_v59 }
 0x284   :  { %v836_v0 = vpop.eup %835  ;;  %861 = vpow2.f32 %v720_v58 }
 0x285   :  { %v838_v1 = vpop.eup %837  ;;  %648 = vst.msk [vmem:[%s1081_s7 + $0x10] sm:$0xff] %vm645_vm2, %v836_v0  ;;  %863 = vrcp.f32 %v602_v61 }
 0x286   :  { %v840_v2 = vpop.eup %839  ;;  %v607_v3 = vadd.f32 1.0, %v838_v1  ;;  %865 = vpow2.f32 %v718_v63 }
 0x287   :  { %v842_v4 = vpop.eup %841  ;;  %646 = vst.msk [vmem:[%s1081_s7] sm:$0xff] %vm645_vm2, %v840_v2 }
 0x288   :  { %v844_v62 = vpop.eup %843  ;;  %867 = vrcp.f32 %v607_v3  ;;  %v605_v5 = vadd.f32 1.0, %v842_v4 }
 0x289   :  { %v846_v6 = vpop.eup %845  ;;  %649 = vst.msk [vmem:[%s1081_s7 + $0x18] sm:$0xff] %vm645_vm2, %v844_v62 }
 0x28a   :  { %v848_v7 = vpop.eup %847  ;;  %869 = vrcp.f32 %v605_v5  ;;  %v608_v8 = vadd.f32 1.0, %v846_v6 }
 0x28b   :  { %v850_v9 = vpop.eup %849  ;;  %647 = vst.msk [vmem:[%s1081_s7 + $0x8] sm:$0xff] %vm645_vm2, %v848_v7 }
 0x28c   :  { %v852_v10 = vpop.eup %851  ;;  %871 = vrcp.f32 %v608_v8  ;;  %v606_v11 = vadd.f32 1.0, %v850_v9 }
 0x28d   :  { %v854_v12 = vpop.eup %853  ;;  %652 = vst.msk [vmem:[%s1081_s7 + $0x30] sm:$0xff] %vm645_vm2, %v852_v10 }
 0x28e   :  { %v856_v13 = vpop.eup %855  ;;  %873 = vrcp.f32 %v606_v11  ;;  %v611_v14 = vadd.f32 1.0, %v854_v12 }
 0x28f   :  { %v858_v15 = vpop.eup %857  ;;  %650 = vst.msk [vmem:[%s1081_s7 + $0x20] sm:$0xff] %vm645_vm2, %v856_v13 }
 0x290   :  { %v860_v16 = vpop.eup %859  ;;  %875 = vrcp.f32 %v611_v14  ;;  %v609_v17 = vadd.f32 1.0, %v858_v15 }
 0x291   :  { %v862_v18 = vpop.eup %861  ;;  %653 = vst.msk [vmem:[%s1081_s7 + $0x38] sm:$0xff] %vm645_vm2, %v860_v16 }
 0x292   :  { %v864_v19 = vpop.eup %863  ;;  %877 = vrcp.f32 %v609_v17  ;;  %v612_v20 = vadd.f32 1.0, %v862_v18 }
 0x293   :  { %v866_v21 = vpop.eup %865  ;;  %651 = vst.msk [vmem:[%s1081_s7 + $0x28] sm:$0xff] %vm645_vm2, %v864_v19 }
 0x294   :  { %879 = vrcp.f32 %v612_v20  ;;  %v610_v22 = vadd.f32 1.0, %v866_v21 }
 0x295   :  { %v868_v23 = vpop.eup %867 }
 0x296   :  { %656 = vst.msk [vmem:[%s1081_s7 + $0x50] sm:$0xff] %vm645_vm2, %v868_v23  ;;  %881 = vrcp.f32 %v610_v22 }
 0x297   :  { %v870_v24 = vpop.eup %869 }
 0x298   :  { %654 = vst.msk [vmem:[%s1081_s7 + $0x40] sm:$0xff] %vm645_vm2, %v870_v24 }
 0x299   :  { %v872_v25 = vpop.eup %871 }
 0x29a   :  { %657 = vst.msk [vmem:[%s1081_s7 + $0x58] sm:$0xff] %vm645_vm2, %v872_v25 }
 0x29b   :  { %v874_v26 = vpop.eup %873 }
 0x29c   :  { %655 = vst.msk [vmem:[%s1081_s7 + $0x48] sm:$0xff] %vm645_vm2, %v874_v26 }
 0x29d   :  { %v876_v27 = vpop.eup %875 }
 0x29e   :  { %660 = vst.msk [vmem:[%s1081_s7 + $0x70] sm:$0xff] %vm645_vm2, %v876_v27 }
 0x29f   :  { %v878_v28 = vpop.eup %877 }
 0x2a0   :  { %658 = vst.msk [vmem:[%s1081_s7 + $0x60] sm:$0xff] %vm645_vm2, %v878_v28 }
 0x2a1   :  { %v880_v29 = vpop.eup %879 }
 0x2a2   :  { %661 = vst.msk [vmem:[%s1081_s7 + $0x78] sm:$0xff] %vm645_vm2, %v880_v29 }
 0x2a3   :  { %v882_v30 = vpop.eup %881 }
 0x2a4   :  { %659 = vst.msk [vmem:[%s1081_s7 + $0x68] sm:$0xff] %vm645_vm2, %v882_v30 }

</bundles_post_ra>
